<compile_context>
chip_gen: v6e
topology: v6e:2x2x1
jax: 0.10.0
libtpu: 0.0.40
codegen_flags: <defaults>
</compile_context>

<pallas_src>
import jax
import jax.numpy as jnp
from jax.experimental import pallas as pl
from jax.experimental.pallas import tpu as pltpu


def _round_up(n, m):
    return ((n + m - 1) // m) * m


def _mlp_vs_kernel(xT_ref, w1_ref, b1_ref, w2_ref, b2_ref, w3_ref, o_ref):
    """Fused value-net tile, batch-in-lanes layout.

    xT_ref : (D,   TB)  bf16   obs^T tile (streamed)
    w1_ref : (H1p, D)   bf16   layer-1 weight (resident)
    b1_ref : (H1p, 1)   f32
    w2_ref : (H2p, H1p) bf16
    b2_ref : (H2p, 1)   f32
    w3_ref : (H2p, 1)   f32    final-layer weight column
    o_ref  : (1,   TB)  f32    V(s) row (b3 added in wrapper)
    """
    xT = xT_ref[...]
    # Layer 1: (H1p, D) @ (D, TB) -> (H1p, TB), f32 accumulation on the MXU.
    h1 = jnp.tanh(
        jnp.dot(w1_ref[...], xT, preferred_element_type=jnp.float32) + b1_ref[...]
    )
    # Layer 2: bf16 MXU inputs, f32 accumulation.
    h2 = jnp.tanh(
        jnp.dot(w2_ref[...], h1.astype(jnp.bfloat16),
                preferred_element_type=jnp.float32) + b2_ref[...]
    )
    # Final layer has a single output row: do it as a VPU multiply + sublane reduction
    # instead of a 1-row MXU matmul.  Result is lane-dense (1, TB).
    o_ref[...] = jnp.sum(h2 * w3_ref[...], axis=0, keepdims=True)


def mlp_vs_net(obs, params, *, block_rows=4096):
    """Run the fused value-net forward pass.

    obs:    (B, obs_dim) float32
    params: dict with w1 (D,H1), b1 (1,H1), w2 (H1,H2), b2 (1,H2), w3 (H2,1), b3 (1,1)
            (weights stored as (in_features, out_features), i.e. torch weight^T)
    returns (B, 1) float32 == V(s)
    """
    obs = jnp.asarray(obs, jnp.float32)
    B, D = obs.shape

    w1, b1 = params["w1"], params["b1"]
    w2, b2 = params["w2"], params["b2"]
    w3, b3 = params["w3"], params["b3"]
    H1, H2 = w1.shape[1], w2.shape[1]

    # --- transpose to (out, in) layout, pad hidden dims to the 8-sublane boundary ---
    # Zero padding is exact: tanh(0 + 0) = 0 and padded rows of w2/w3 are 0.
    H1p = max(_round_up(H1, 8), 8)
    H2p = max(_round_up(H2, 8), 8)

    w1t = jnp.pad(w1.T, ((0, H1p - H1), (0, 0))).astype(jnp.bfloat16)        # (H1p, D)
    b1c = jnp.pad(b1.T, ((0, H1p - H1), (0, 0))).astype(jnp.float32)          # (H1p, 1)
    w2t = jnp.pad(w2.T, ((0, H2p - H2), (0, H1p - H1))).astype(jnp.bfloat16)  # (H2p, H1p)
    b2c = jnp.pad(b2.T, ((0, H2p - H2), (0, 0))).astype(jnp.float32)          # (H2p, 1)
    w3c = jnp.pad(w3, ((0, H2p - H2), (0, 0))).astype(jnp.float32)            # (H2p, 1)
    b3 = jnp.asarray(b3, jnp.float32)                                         # (1, 1)

    # --- batch tiling: batch maps to the 128-lane axis ------------------------------
    # Large TB amortizes per-step overhead; cap at ~ceil(B/2) (rounded to 128) so the
    # grid has >= 2 steps when B allows it (lets v7x use both TensorCores).
    TB = min(block_rows, max(128, _round_up(-(-B // 2), 128)))
    TB = _round_up(TB, 128)
    Bp = _round_up(B, TB)
    grid = (Bp // TB,)

    obsT = jnp.pad(obs.T, ((0, 0), (0, Bp - B))).astype(jnp.bfloat16)         # (D, Bp)

    # weights/biases stay resident across steps: constant block index => no re-DMA
    def _const2d(i):
        return (0, 0)

    in_specs = [
        pl.BlockSpec((D, TB), lambda i: (0, i)),        # obs^T tile, streamed
        pl.BlockSpec((H1p, D), _const2d),               # w1 (resident)
        pl.BlockSpec((H1p, 1), _const2d),               # b1
        pl.BlockSpec((H2p, H1p), _const2d),             # w2
        pl.BlockSpec((H2p, 1), _const2d),               # b2
        pl.BlockSpec((H2p, 1), _const2d),               # w3 column
    ]
    out_specs = pl.BlockSpec((1, TB), lambda i: (0, i))  # lane-dense V(s) row

    cost = pl.CostEstimate(
        flops=int(Bp * (2 * D * H1p + 2 * H1p * H2p + 2 * H2p)),
        transcendentals=int(Bp * (H1p + H2p)),
        bytes_accessed=int(
            Bp * D * 2 + Bp * 4
            + (H1p * D + H1p * H2p) * 2 + (H1p + H2p + H2p) * 4
        ),
    )

    out = pl.pallas_call(
        _mlp_vs_kernel,
        out_shape=jax.ShapeDtypeStruct((1, Bp), jnp.float32),
        grid=grid,
        in_specs=in_specs,
        out_specs=out_specs,
        compiler_params=pltpu.CompilerParams(
            dimension_semantics=("parallel",),
        ),
        cost_estimate=cost,
    )(obsT, w1t, b1c, w2t, b2c, w3c)

    # b3 is a single scalar: add it here rather than wasting a padded VMEM tile.
    return out[0, :B][:, None] + b3


def init_params(key, obs_dim, hidden_size):
    """Deterministic init mimicking torch.nn.Linear default (U[-1/sqrt(fan_in), +])."""
    sizes = [obs_dim] + list(hidden_size) + [1]
    params = {}
    for j in range(len(sizes) - 1):
        fan_in, fan_out = sizes[j], sizes[j + 1]
        key, kw, kb = jax.random.split(key, 3)
        bound = 1.0 / jnp.sqrt(jnp.float32(fan_in))
        params[f"w{j+1}"] = jax.random.uniform(
            kw, (fan_in, fan_out), jnp.float32, -bound, bound
        )
        params[f"b{j+1}"] = jax.random.uniform(
            kb, (1, fan_out), jnp.float32, -bound, bound
        )
    return params


def _reference_f32(obs, params):
    h = jnp.tanh(obs @ params["w1"] + params["b1"])
    h = jnp.tanh(h @ params["w2"] + params["b2"])
    return h @ params["w3"] + params["b3"]


def _reference_bf16(obs, params):
    """Emulates the kernel's numerics: bf16 MXU inputs, f32 accumulation/activations."""
    x = obs.astype(jnp.bfloat16)
    w1 = params["w1"].astype(jnp.bfloat16)
    w2 = params["w2"].astype(jnp.bfloat16)
    h = jnp.tanh(jnp.dot(x, w1, preferred_element_type=jnp.float32) + params["b1"])
    h = jnp.tanh(jnp.dot(h.astype(jnp.bfloat16), w2,
                         preferred_element_type=jnp.float32) + params["b2"])
    return jnp.dot(h, params["w3"]) + params["b3"]


if __name__ == "__main__":
    key = jax.random.PRNGKey(0)
    obs_dim = 16
    hidden_size = [32, 32]

    k_obs, k_params, k_obs2 = jax.random.split(key, 3)
    params = init_params(k_params, obs_dim, hidden_size)

    # small canonical shape (single grid step)
    batch = 8
    obs = jax.random.normal(k_obs, (batch, obs_dim), jnp.float32)
    v = jax.block_until_ready(mlp_vs_net(obs, params))
    assert v.shape == (batch, 1)
    assert jnp.allclose(v, _reference_bf16(obs, params), atol=1e-3, rtol=1e-3)
    assert jnp.allclose(v, _reference_f32(obs, params), atol=5e-2, rtol=5e-2)

    # multi-step grid + ragged-tail path (B not divisible by TB)
    batch2 = 200
    obs2 = jax.random.normal(k_obs2, (batch2, obs_dim), jnp.float32)
    v2 = jax.block_until_ready(mlp_vs_net(obs2, params))
    assert v2.shape == (batch2, 1)
    assert jnp.allclose(v2, _reference_bf16(obs2, params), atol=1e-3, rtol=1e-3)
    assert jnp.allclose(v2, _reference_f32(obs2, params), atol=5e-2, rtol=5e-2)

    print("KERNEL_OK")
</pallas_src>

<mosaic_0001>
module attributes {stable_mosaic.version = 11 : i64} {
  func.func @_mlp_vs_kernel(%arg0: i32, %arg1: memref<16x128xbf16, #tpu.memory_space<vmem>>, %arg2: memref<32x16xbf16, #tpu.memory_space<vmem>>, %arg3: memref<32x1xf32, #tpu.memory_space<vmem>>, %arg4: memref<32x32xbf16, #tpu.memory_space<vmem>>, %arg5: memref<32x1xf32, #tpu.memory_space<vmem>>, %arg6: memref<32x1xf32, #tpu.memory_space<vmem>>, %arg7: memref<1x128xf32, #tpu.memory_space<vmem>>) attributes {dimension_semantics = [#tpu.dimension_semantics<parallel>], iteration_bounds = array<i64: 1>, scalar_prefetch = 0 : i64, scratch_operands = 0 : i64, tpu.core_type = #tpu.core_type<tc>, window_params = [{transform_indices = @transform_0, window_bounds = array<i64: 16, 128>}, {pipeline_mode = #tpu.pipeline_mode<synchronous>, transform_indices = @transform_1, window_bounds = array<i64: 32, 16>}, {pipeline_mode = #tpu.pipeline_mode<synchronous>, transform_indices = @transform_2, window_bounds = array<i64: 32, 1>}, {pipeline_mode = #tpu.pipeline_mode<synchronous>, transform_indices = @transform_3, window_bounds = array<i64: 32, 32>}, {pipeline_mode = #tpu.pipeline_mode<synchronous>, transform_indices = @transform_4, window_bounds = array<i64: 32, 1>}, {pipeline_mode = #tpu.pipeline_mode<synchronous>, transform_indices = @transform_5, window_bounds = array<i64: 32, 1>}, {transform_indices = @transform_6, window_bounds = array<i64: 1, 128>}]} {
    %c0 = arith.constant 0 : index
    %c0_0 = arith.constant 0 : index
    %0 = vector.load %arg1[%c0, %c0_0] : memref<16x128xbf16, #tpu.memory_space<vmem>>, vector<16x128xbf16>
    %c0_1 = arith.constant 0 : index
    %c0_2 = arith.constant 0 : index
    %1 = vector.load %arg2[%c0_1, %c0_2] : memref<32x16xbf16, #tpu.memory_space<vmem>>, vector<32x16xbf16>
    %cst = arith.constant dense<0.000000e+00> : vector<32x128xf32>
    %2 = tpu.matmul %1, %0, %cst {dimension_numbers = #tpu.dot_dimension_numbers<[1], [0], [0], [1], [0, 0, 1, 1], [], []>} : vector<32x16xbf16>, vector<16x128xbf16>, vector<32x128xf32> -> vector<32x128xf32>
    %c0_3 = arith.constant 0 : index
    %c0_4 = arith.constant 0 : index
    %3 = vector.load %arg3[%c0_3, %c0_4] : memref<32x1xf32, #tpu.memory_space<vmem>>, vector<32x1xf32>
    %4 = vector.broadcast %3 : vector<32x1xf32> to vector<32x128xf32>
    %5 = arith.addf %2, %4 : vector<32x128xf32>
    %6 = math.tanh %5 : vector<32x128xf32>
    %c0_5 = arith.constant 0 : index
    %c0_6 = arith.constant 0 : index
    %7 = vector.load %arg4[%c0_5, %c0_6] : memref<32x32xbf16, #tpu.memory_space<vmem>>, vector<32x32xbf16>
    %8 = arith.truncf %6 : vector<32x128xf32> to vector<32x128xbf16>
    %cst_7 = arith.constant dense<0.000000e+00> : vector<32x128xf32>
    %9 = tpu.matmul %7, %8, %cst_7 {dimension_numbers = #tpu.dot_dimension_numbers<[1], [0], [0], [1], [0, 0, 1, 1], [], []>} : vector<32x32xbf16>, vector<32x128xbf16>, vector<32x128xf32> -> vector<32x128xf32>
    %c0_8 = arith.constant 0 : index
    %c0_9 = arith.constant 0 : index
    %10 = vector.load %arg5[%c0_8, %c0_9] : memref<32x1xf32, #tpu.memory_space<vmem>>, vector<32x1xf32>
    %11 = vector.broadcast %10 : vector<32x1xf32> to vector<32x128xf32>
    %12 = arith.addf %9, %11 : vector<32x128xf32>
    %13 = math.tanh %12 : vector<32x128xf32>
    %c0_10 = arith.constant 0 : index
    %c0_11 = arith.constant 0 : index
    %14 = vector.load %arg6[%c0_10, %c0_11] : memref<32x1xf32, #tpu.memory_space<vmem>>, vector<32x1xf32>
    %15 = vector.broadcast %14 : vector<32x1xf32> to vector<32x128xf32>
    %16 = arith.mulf %13, %15 : vector<32x128xf32>
    %cst_12 = arith.constant dense<0.000000e+00> : vector<128xf32>
    %17 = vector.multi_reduction <add>, %16, %cst_12 [0] : vector<32x128xf32> to vector<128xf32>
    %18 = vector.shape_cast %17 : vector<128xf32> to vector<1x128xf32>
    %c0_13 = arith.constant 0 : index
    %c0_14 = arith.constant 0 : index
    %19 = vector.load %arg7[%c0_13, %c0_14] : memref<1x128xf32, #tpu.memory_space<vmem>>, vector<1x128xf32>
    tpu.vector_store %arg7[%c0_13, %c0_14], %18 {strides = array<i32>} : memref<1x128xf32, #tpu.memory_space<vmem>>, vector<1x128xf32>,
    return
  }
  func.func @transform_0(%arg0: i32) -> (i32, i32) {
    %c0_i32 = arith.constant 0 : i32
    %c0_i32_0 = arith.constant 0 : i32
    return %c0_i32, %arg0 : i32, i32
  }
  func.func @transform_1(%arg0: i32) -> (i32, i32) {
    %c0_i32 = arith.constant 0 : i32
    %c0_i32_0 = arith.constant 0 : i32
    %c0_i32_1 = arith.constant 0 : i32
    return %c0_i32, %c0_i32_0 : i32, i32
  }
  func.func @transform_2(%arg0: i32) -> (i32, i32) {
    %c0_i32 = arith.constant 0 : i32
    %c0_i32_0 = arith.constant 0 : i32
    %c0_i32_1 = arith.constant 0 : i32
    return %c0_i32, %c0_i32_0 : i32, i32
  }
  func.func @transform_3(%arg0: i32) -> (i32, i32) {
    %c0_i32 = arith.constant 0 : i32
    %c0_i32_0 = arith.constant 0 : i32
    %c0_i32_1 = arith.constant 0 : i32
    return %c0_i32, %c0_i32_0 : i32, i32
  }
  func.func @transform_4(%arg0: i32) -> (i32, i32) {
    %c0_i32 = arith.constant 0 : i32
    %c0_i32_0 = arith.constant 0 : i32
    %c0_i32_1 = arith.constant 0 : i32
    return %c0_i32, %c0_i32_0 : i32, i32
  }
  func.func @transform_5(%arg0: i32) -> (i32, i32) {
    %c0_i32 = arith.constant 0 : i32
    %c0_i32_0 = arith.constant 0 : i32
    %c0_i32_1 = arith.constant 0 : i32
    return %c0_i32, %c0_i32_0 : i32, i32
  }
  func.func @transform_6(%arg0: i32) -> (i32, i32) {
    %c0_i32 = arith.constant 0 : i32
    %c0_i32_0 = arith.constant 0 : i32
    return %c0_i32, %arg0 : i32, i32
  }
}

</mosaic_0001>

<bundles_post_ra>
// kernel: tpu_custom_call.1
= control target key start
LH: loop header
LB: loop body
LE: loop exit
PB: predicated region body
PF: predicated region fallthrough
CT: control target
= control target key end

     0   :  { %vm71_vm0 = vcmask 130048   ;;  %v360_v3 = vmov 0   ;;  %s453_s0 = inlined_call_operand.vmem [shape: bf16[16,128], index: 0, kind: input, shape index: {}]   ;;  %s454_s1 = inlined_call_operand.vmem [shape: bf16[32,16], index: 1, kind: input, shape index: {}]   ;;  %s455_s2 = inlined_call_operand.vmem [shape: f32[32,1], index: 2, kind: input, shape index: {}]   ;;  %s456_s3 = inlined_call_operand.vmem [shape: bf16[32,32], index: 3, kind: input, shape index: {}]   ;;  %s457_s4 = inlined_call_operand.vmem [shape: f32[32,1], index: 4, kind: input, shape index: {}]   ;;  %s458_s5 = inlined_call_operand.vmem [shape: f32[32,1], index: 5, kind: input, shape index: {}]   ;;  %s459_s6 = inlined_call_operand.hbm [shape: f32[1,128], index: 6, kind: output, shape index: {}]  }
   0x1   :  { %v317_v0 = vld [vmem:[%s453_s0] sm:$0xff]   ;;  %v319_v2 = vld [vmem:[%s454_s1 + $0x8] sm:$0xff]   ;;  %315 = vset.pattern.permute.xlu0 %v360_v3  ;;  %v33_v4 = vld [vmem:[%s455_s2 + $0x10] sm:$0xff]  ;;  %316 = vset.pattern.permute.xlu1 %v360_v3 }
   0x2   :  { %v318_v1 = vld [vmem:[%s454_s1] sm:$0xff]   ;;  %299 = vmatprep.subr.bf16.mxu0 %v317_v0  ;;  %47 = vperm.xlu0 %315, %v33_v4   ;;  %v34_v6 = vld [vmem:[%s455_s2 + $0x18] sm:$0xff]  ;;  %v32_v7 = vld [vmem:[%s455_s2 + $0x8] sm:$0xff] }
   0x3   :  { %300 = vmatpush3.bf16.msra.mxu0 %v317_v0  ;;  %301 = vmatprep.mubr.msk.bf16.mxu0 %vm71_vm0, %v318_v1  ;;  %v31_v5 = vld [vmem:[%s455_s2] sm:$0xff] }
   0x4   :  { %37 = vperm.xlu1 %316, %v31_v5  }
   0x6   :  { %302 = vmatmul.mubr.msk.bf16.vlgmr.msra.gmra.mxu0 %vm71_vm0, %v319_v2  ;;  %52 = vperm.xlu0 %315, %v34_v6  }
   0x7   :  { %11 = vsyncpa [#allocation3], 0  ;;  %v137_v8 = vld [vmem:[%s457_s4] sm:$0xff]  ;;  %v138_v9 = vld [vmem:[%s457_s4 + $0x8] sm:$0xff]  ;;  %vm171_vm1 = vcmask 261120  }
   0x8   :  { %42 = vperm.xlu1 %316, %v32_v7   ;;  %v139_v10 = vld [vmem:[%s457_s4 + $0x10] sm:$0xff]  ;;  %v140_v11 = vld [vmem:[%s457_s4 + $0x18] sm:$0xff]  ;;  %v231_v12 = vld [vmem:[%s458_s5] sm:$0xff] }
   0x9   :  { %v232_v13 = vld [vmem:[%s458_s5 + $0x8] sm:$0xff]  ;;  %v233_v14 = vld [vmem:[%s458_s5 + $0x10] sm:$0xff]  ;;  %v234_v15 = vld [vmem:[%s458_s5 + $0x18] sm:$0xff] }
   0xa   :  { %143 = vperm.xlu0 %315, %v137_v8   ;;  %v320_v16 = vld [vmem:[%s456_s3] sm:$0xff]   ;;  %v321_v35 = vld [vmem:[%s456_s3 + $0x8] sm:$0xff]   ;;  %s361_s3 = smov [#allocation2]  }
   0xb   :  { %309 = vmatprep.mubr.msk.bf16.mxu1 %vm171_vm1, %v320_v16  ;;  %s275_s26 = sshll.u32 %s361_s3, 4  ;;  %s276_s26 = int_to_ptr.vmem [resolvable:$true] %s275_s26 }
   0xc   :  { %148 = vperm.xlu1 %316, %v138_v9   ;;  %s338_s27 = scalar_lea.vmem %s276_s26, 16  ;;  %s342_s28 = scalar_lea.vmem %s276_s26, 32 }
   0xd   :  { %p339_p0 = scmp.ne.s32.totalorder %s276_s26, %s338_s27  ;;  %p343_p1 = scmp.lt.s32.totalorder %s276_s26, %s276_s26 }
   0xe   :  { %153 = vperm.xlu0 %315, %v139_v10   ;;  %p344_p2 = scmp.lt.s32.totalorder %s342_s28, %s338_s27 }
  0x10   :  { %158 = vperm.xlu1 %316, %v140_v11   ;;  %p345_p3 = por %p344_p2, %p343_p1 }
  0x12   :  { %237 = vperm.xlu0 %315, %v231_v12   ;;  %p346_p4 = pnand %p345_p3, %p339_p0 }
  0x14   :  { %242 = vperm.xlu1 %316, %v232_v13  }
  0x16   :  { %247 = vperm.xlu0 %315, %v233_v14  }
  0x18   :  { %252 = vperm.xlu1 %316, %v234_v15  }
  0x7d   :  { %v48_v17 = vpop.permute.xlu0 %47 }
  0x7f   :  { %v38_v18 = vpop.permute.xlu1 %37 }
  0x81   :  { %v53_v22 = vpop.permute.xlu0 %52 }
  0x83   :  { %v43_v26 = vpop.permute.xlu1 %42 }
  0x85   :  { %v144_v36 = vpop.permute.xlu0 %143 }
  0x87   :  { %v149_v37 = vpop.permute.xlu1 %148 }
  0x89   :  { %v154_v40 = vpop.permute.xlu0 %153 }
  0x8b   :  { %v159_v44 = vpop.permute.xlu1 %158 }
  0x8d   :  { %v238_v48 = vpop.permute.xlu0 %237 }
  0x8f   :  { %v243_v50 = vpop.permute.xlu1 %242 }
  0x91   :  { %v248_v56 = vpop.permute.xlu0 %247 }
  0x93   :  { %v253_v59 = vpop.permute.xlu1 %252 }
  0xc6   :  { %v303_v19 = vpop.f32.mrf.mxu0 }
  0xc7   :  { %v121_v20 = vadd.f32 %v303_v19, %v48_v17 }
  0xc8   :  { %v112_v21 = vpop.f32.mrf.mxu0 }
  0xc9   :  { %v113_v23 = vadd.f32 %v112_v21, %v38_v18  ;;  %322 = vtanh.f32 %v121_v20 }
  0xca   :  { %v304_v24 = vpop.f32.mrf.mxu0 }
  0xcb   :  { %v124_v25 = vadd.f32 %v304_v24, %v53_v22 }
  0xcc   :  { %v115_v27 = vpop.f32.mrf.mxu0 }
  0xcd   :  { %324 = vtanh.f32 %v124_v25  ;;  %v116_v28 = vadd.f32 %v115_v27, %v43_v26 }
  0xce   :  { %326 = vtanh.f32 %v113_v23 }
  0xcf   :  { %328 = vtanh.f32 %v116_v28 }
  0xd6   :  { %v323_v29 = vpop.eup %322 }
  0xda   :  { %v325_v30 = vpop.eup %324 }
  0xdb   :  { %v327_v31 = vpop.eup %326  ;;  %v136_v32 = vpack.c.bf16 %v325_v30, %v323_v29 }
  0xdc   :  { %v329_v33 = vpop.eup %328 }
  0xdd   :  { %305 = vmatprep.subr.bf16.mxu1 %v136_v32  ;;  %v135_v34 = vpack.c.bf16 %v329_v33, %v327_v31 }
  0xde   :  { %306 = vmatpush3.bf16.msra.mxu1 %v136_v32 }
  0xdf   :  { %307 = vmatprep.subr.bf16.mxu1 %v135_v34 }
  0xe2   :  { %308 = vmatpush3.bf16.msra.mxu1 %v135_v34 }
  0xe5   :  { %310 = vmatmul.mubr.msk.bf16.vlgmr.msra.gmra.mxu1 %vm171_vm1, %v321_v35 }
 0x1a5   :  { %v311_v38 = vpop.f32.mrf.mxu1 }
 0x1a6   :  { %v221_v42 = vadd.f32 %v311_v38, %v154_v40 }
 0x1a7   :  { %v212_v39 = vpop.f32.mrf.mxu1 }
 0x1a8   :  { %v213_v41 = vadd.f32 %v212_v39, %v144_v36 }
 0x1a9   :  { %v312_v43 = vpop.f32.mrf.mxu1 }
 0x1aa   :  { %330 = vtanh.f32 %v213_v41  ;;  %v224_v46 = vadd.f32 %v312_v43, %v159_v44 }
 0x1ab   :  { %v215_v45 = vpop.f32.mrf.mxu1  ;;  %332 = vtanh.f32 %v221_v42 }
 0x1ac   :  { %v216_v47 = vadd.f32 %v215_v45, %v149_v37 }
 0x1ae   :  { %334 = vtanh.f32 %v216_v47 }
 0x1af   :  { %336 = vtanh.f32 %v224_v46 }
 0x1b7   :  { %v331_v49 = vpop.eup %330 }
 0x1b8   :  { %v333_v51 = vpop.eup %332  ;;  %v255_v53 = vmul.f32 %v331_v49, %v238_v48 }
 0x1b9   :  { %v257_v57 = vmul.f32 %v333_v51, %v248_v56 }
 0x1bb   :  { %v335_v52 = vpop.eup %334 }
 0x1bc   :  { %v256_v54 = vmul.f32 %v335_v52, %v243_v50  ;;  %v337_v55 = vpop.eup %336 }
 0x1bd   :  { %v258_v60 = vmul.f32 %v337_v55, %v253_v59 }
 0x1be   :  { %v259_v58 = vadd.f32 %v256_v54, %v255_v53 }
 0x1c0   :  { %v260_v61 = vadd.f32 %v259_v58, %v257_v57 }
 0x1c2   :  { %v261_v62 = vadd.f32 %v260_v61, %v258_v60 }
 0x1c4   :  { %v262_v63 = vrot.slane %v261_v62, 4 }
 0x1c6   :  { %v263_v0 = vadd.f32 %v262_v63, %v261_v62 }
 0x1c8   :  { %v264_v1 = vrot.slane %v263_v0, 2 }
 0x1ca   :  { %v265_v2 = vadd.f32 %v264_v1, %v263_v0 }
 0x1cc   :  { %v266_v3 = vrot.slane %v265_v2, 1 }
 0x1ce   :  { %v267_v4 = vadd.f32 %v266_v3, %v265_v2 }
 0x1d0   :  { %268 = vst [vmem:[#allocation2] sm:$0x1] %v267_v4 }
 0x1d1   :  { %349 = shalt.err (!%p346_p4)
}
 0x1d2   :  { %278 = dma.vmem_to_hbm [thread:$0]  %s276_s26, 16, %s459_s6, [#allocation3]  }
 0x1d3   :  { %358 = dma.done.wait [#allocation3], 16  }
 0x1d4   :  { %359 = vsyncadd [#allocation3], 4294967280 }
 0x1d5   :  { %282 = vsyncpa [#allocation3], 1 }

</bundles_post_ra>
